<compile_context>
chip_gen: v5e
topology: v5e:2x2
jax: 0.10.0
libtpu: 0.0.40
codegen_flags: <defaults>
</compile_context>

<pallas_src>
import functools

import jax
import jax.numpy as jnp
from jax import lax
from jax.experimental import pallas as pl
from jax.experimental.pallas import tpu as pltpu


def _round_up(a, b):
    return (a + b - 1) // b * b


def _gem_kernel(p_ref, x_ref, o_ref, acc_ref, *, s_total, eps, needs_mask):
    """One (row-block, spatial-block) grid step of GeM pooling.

    p_ref   : SMEM (1, 1) f32    learnable exponent p
    x_ref   : VMEM (TR, TS)      tile of the flattened input
    o_ref   : VMEM (TR, 128)     pooled value broadcast across 128 lanes
    acc_ref : VMEM (TR, 1) f32   per-row partial-sum accumulator (persists over S axis)
    """
    s_idx = pl.program_id(1)
    n_s = pl.num_programs(1)
    p = p_ref[0, 0]

    @pl.when(s_idx == 0)
    def _init():
        acc_ref[...] = jnp.zeros_like(acc_ref)

    x = x_ref[...].astype(jnp.float32)
    xc = jnp.maximum(x, eps)                    # clamp(min=eps) -> strictly > 0
    # x ** p with a runtime scalar exponent (exact for x > 0). EUP: exp + log / elem.
    # TODO(synk): a bf16 exp/log path would halve EUP pressure on v6e/v7x; kept f32 for
    # accuracy and v5e compatibility.
    xp = jnp.exp(p * jnp.log(xc))

    if needs_mask:
        # Trailing spatial block is partial: zero lanes >= s_total so whatever the
        # partial-block DMA left in the out-of-range lanes never reaches the sum.
        tr, ts = x_ref.shape
        col = s_idx * ts + lax.broadcasted_iota(jnp.int32, (tr, ts), 1)
        xp = jnp.where(col < s_total, xp, 0.0)

    # Per-block cross-lane partial reduce (XLU slot) into a tiny per-row accumulator.
    acc_ref[...] += jnp.sum(xp, axis=-1, keepdims=True)

    @pl.when(s_idx == n_s - 1)
    def _finalize():
        mean = acc_ref[...] * (1.0 / float(s_total))        # (TR, 1) true mean over S
        y = jnp.exp(jnp.log(mean) * (1.0 / p))              # mean ** (1/p)
        # Lane-dense store: full-width unmasked vst on a (TR, 128) tile.
        o_ref[...] = jnp.broadcast_to(y, o_ref.shape).astype(o_ref.dtype)


def gem_layer(x, p, eps=1e-6, *, row_tile=256, spatial_tile=2048):
    """GeM pooling. x: (N, C, D, H, W); p: scalar array. Returns (N, C, 1, 1, 1)."""
    N, C, D, H, W = x.shape
    rows = N * C
    S = D * H * W
    xf = x.reshape(rows, S)

    # Sanitize tile requests to (8, 128)-aligned values.
    row_tile = max(8, _round_up(int(row_tile), 8))
    spatial_tile = max(128, (int(spatial_tile) // 128) * 128)

    # Row tile: up to `row_tile` rows per step (sublane-aligned). Trailing partial
    # row blocks are handled by Pallas; extra rows are discarded below.
    TR = min(row_tile, _round_up(rows, 8))
    n_row_blocks = pl.cdiv(rows, TR)

    # Spatial tile: lane-aligned, capped so the double-buffered input stays a few MiB
    # on every TPU generation (incl. v7x's smaller VMEM).
    S_lane = _round_up(S, 128)
    TS = S_lane if S_lane <= spatial_tile else spatial_tile
    n_s_blocks = pl.cdiv(S, TS)
    needs_mask = (n_s_blocks * TS != S)

    rows_out = n_row_blocks * TR                 # pad only the (tiny) output array
    p_arr = jnp.reshape(p.astype(jnp.float32), (1, 1))

    itemsize = jnp.dtype(x.dtype).itemsize
    cost = pl.CostEstimate(
        flops=4 * rows * S,                       # max, mul, where/add, accumulate
        transcendentals=2 * rows * S,             # exp + log per element
        bytes_accessed=rows * S * itemsize + rows_out * 128 * itemsize,
    )

    out = pl.pallas_call(
        functools.partial(
            _gem_kernel, s_total=S, eps=float(eps), needs_mask=needs_mask
        ),
        out_shape=jax.ShapeDtypeStruct((rows_out, 128), x.dtype),
        grid_spec=pltpu.PrefetchScalarGridSpec(
            num_scalar_prefetch=0,
            grid=(n_row_blocks, n_s_blocks),
            in_specs=[
                pl.BlockSpec(memory_space=pltpu.SMEM),            # p (scalar)
                pl.BlockSpec((TR, TS), lambda i, s: (i, s)),      # x tile
            ],
            # Lane-dense output block; same block across the reduction axis.
            out_specs=pl.BlockSpec((TR, 128), lambda i, s: (i, 0)),
            scratch_shapes=[pltpu.VMEM((TR, 1), jnp.float32)],
        ),
        compiler_params=pltpu.CompilerParams(
            dimension_semantics=("parallel", "arbitrary"),
        ),
        cost_estimate=cost,
    )(p_arr, xf)

    return out[:rows, 0].reshape(N, C, 1, 1, 1)


def gem_reference(x, p, eps=1e-6):
    pf = jnp.reshape(p, ()).astype(jnp.float32)
    xc = jnp.maximum(x.astype(jnp.float32), eps) ** pf
    m = jnp.mean(xc, axis=(-3, -2, -1), keepdims=True)
    return (m ** (1.0 / pf)).astype(x.dtype)


if __name__ == "__main__":
    key = jax.random.PRNGKey(0)
    p = jnp.ones((1,), dtype=jnp.float32) * 3.0   # nn.Parameter(torch.ones(1) * 3)
    eps = 1e-6

    # (N, C, D, H, W) feature map.
    N, C, D, H, W = 2, 4, 4, 8, 8
    x = jax.random.normal(key, (N, C, D, H, W), dtype=jnp.float32)

    # 1) Default tiling.
    y = jax.block_until_ready(gem_layer(x, p, eps))
    y_ref = gem_reference(x, p, eps)
    assert y.shape == (N, C, 1, 1, 1)
    assert jnp.allclose(y, y_ref, atol=1e-5, rtol=1e-5), (
        f"default tiling: max abs err = {jnp.max(jnp.abs(y - y_ref))}"
    )

    # 2) Force multiple spatial blocks to exercise the cross-block accumulator.
    y2 = jax.block_until_ready(gem_layer(x, p, eps, row_tile=8, spatial_tile=128))
    assert jnp.allclose(y2, y_ref, atol=1e-5, rtol=1e-5), (
        f"multi-block: max abs err = {jnp.max(jnp.abs(y2 - y_ref))}"
    )

    # 3) Ragged shape (rows not a multiple of 8, spatial not a multiple of 128) to
    #    exercise partial blocks + in-kernel lane masking.
    x3 = jax.random.normal(jax.random.PRNGKey(0), (1, 3, 3, 5, 7), dtype=jnp.float32)
    y3 = jax.block_until_ready(gem_layer(x3, p, eps))
    y3_ref = gem_reference(x3, p, eps)
    assert y3.shape == (1, 3, 1, 1, 1)
    assert jnp.allclose(y3, y3_ref, atol=1e-5, rtol=1e-5), (
        f"ragged: max abs err = {jnp.max(jnp.abs(y3 - y3_ref))}"
    )

    print("KERNEL_OK")
</pallas_src>

<mosaic_0001>
module attributes {stable_mosaic.version = 11 : i64} {
  func.func @_gem_kernel(%arg0: i32, %arg1: i32, %arg2: memref<1x1xf32, #tpu.memory_space<smem>>, %arg3: memref<8x256xf32, #tpu.memory_space<vmem>>, %arg4: memref<8x128xf32, #tpu.memory_space<vmem>>, %arg5: memref<8x1xf32, #tpu.memory_space<vmem>>) attributes {dimension_semantics = [#tpu.dimension_semantics<parallel>, #tpu.dimension_semantics<arbitrary>], iteration_bounds = array<i64: 1, 1>, scalar_prefetch = 0 : i64, scratch_operands = 1 : i64, tpu.core_type = #tpu.core_type<tc>, window_params = [{transform_indices = @transform_0, window_bounds = array<i64: 1, 1>}, {transform_indices = @transform_1, window_bounds = array<i64: 8, 256>}, {transform_indices = @transform_2, window_bounds = array<i64: 8, 128>}]} {
    %c0 = arith.constant 0 : index
    %c0_0 = arith.constant 0 : index
    %0 = memref.load %arg2[%c0, %c0_0] : memref<1x1xf32, #tpu.memory_space<smem>>
    %c0_i32 = arith.constant 0 : i32
    %1 = arith.cmpi eq, %arg1, %c0_i32 : i32
    %2 = arith.extui %1 : i1 to i32
    %c0_i32_1 = arith.constant 0 : i32
    %3 = arith.cmpi ne, %2, %c0_i32_1 : i32
    scf.if %3 {
      %cst_11 = arith.constant 0.000000e+00 : f32
      %19 = vector.broadcast %cst_11 : f32 to vector<8x1xf32>
      %c0_12 = arith.constant 0 : index
      %c0_13 = arith.constant 0 : index
      %20 = vector.load %arg5[%c0_12, %c0_13] : memref<8x1xf32, #tpu.memory_space<vmem>>, vector<8x1xf32>
      tpu.vector_store %arg5[%c0_12, %c0_13], %19 {strides = array<i32>} : memref<8x1xf32, #tpu.memory_space<vmem>>, vector<8x1xf32>,
    } else {
    }
    %c0_2 = arith.constant 0 : index
    %c0_3 = arith.constant 0 : index
    %4 = vector.load %arg3[%c0_2, %c0_3] : memref<8x256xf32, #tpu.memory_space<vmem>>, vector<8x256xf32>
    %cst = arith.constant 9.99999997E-7 : f32
    %5 = vector.broadcast %cst : f32 to vector<8x256xf32>
    %6 = arith.maximumf %4, %5 : vector<8x256xf32>
    %7 = math.log %6 : vector<8x256xf32>
    %8 = vector.broadcast %0 : f32 to vector<8x256xf32>
    %9 = arith.mulf %8, %7 : vector<8x256xf32>
    %10 = math.exp %9 : vector<8x256xf32>
    %c0_4 = arith.constant 0 : index
    %c0_5 = arith.constant 0 : index
    %11 = vector.load %arg5[%c0_4, %c0_5] : memref<8x1xf32, #tpu.memory_space<vmem>>, vector<8x1xf32>
    %cst_6 = arith.constant dense<0.000000e+00> : vector<8xf32>
    %12 = vector.multi_reduction <add>, %10, %cst_6 [1] : vector<8x256xf32> to vector<8xf32>
    %13 = vector.shape_cast %12 : vector<8xf32> to vector<8x1xf32>
    %14 = arith.addf %11, %13 : vector<8x1xf32>
    %c0_7 = arith.constant 0 : index
    %c0_8 = arith.constant 0 : index
    %15 = vector.load %arg5[%c0_7, %c0_8] : memref<8x1xf32, #tpu.memory_space<vmem>>, vector<8x1xf32>
    tpu.vector_store %arg5[%c0_7, %c0_8], %14 {strides = array<i32>} : memref<8x1xf32, #tpu.memory_space<vmem>>, vector<8x1xf32>,
    %c0_i32_9 = arith.constant 0 : i32
    %16 = arith.cmpi eq, %arg1, %c0_i32_9 : i32
    %17 = arith.extui %16 : i1 to i32
    %c0_i32_10 = arith.constant 0 : i32
    %18 = arith.cmpi ne, %17, %c0_i32_10 : i32
    scf.if %18 {
      %c0_11 = arith.constant 0 : index
      %c0_12 = arith.constant 0 : index
      %19 = vector.load %arg5[%c0_11, %c0_12] : memref<8x1xf32, #tpu.memory_space<vmem>>, vector<8x1xf32>
      %cst_13 = arith.constant 3.906250e-03 : f32
      %20 = vector.broadcast %cst_13 : f32 to vector<8x1xf32>
      %21 = arith.mulf %19, %20 : vector<8x1xf32>
      %22 = math.log %21 : vector<8x1xf32>
      %cst_14 = arith.constant 1.000000e+00 : f32
      %23 = arith.divf %cst_14, %0 : f32
      %24 = vector.broadcast %23 : f32 to vector<8x1xf32>
      %25 = arith.mulf %22, %24 : vector<8x1xf32>
      %26 = math.exp %25 : vector<8x1xf32>
      %27 = vector.shape_cast %26 : vector<8x1xf32> to vector<8x1xf32>
      %28 = vector.broadcast %27 : vector<8x1xf32> to vector<8x128xf32>
      %c0_15 = arith.constant 0 : index
      %c0_16 = arith.constant 0 : index
      %29 = vector.load %arg4[%c0_15, %c0_16] : memref<8x128xf32, #tpu.memory_space<vmem>>, vector<8x128xf32>
      tpu.vector_store %arg4[%c0_15, %c0_16], %28 {strides = array<i32>} : memref<8x128xf32, #tpu.memory_space<vmem>>, vector<8x128xf32>,
    } else {
    }
    return
  }
  func.func @transform_0(%arg0: i32, %arg1: i32) -> (i32, i32) {
    %c0_i32 = arith.constant 0 : i32
    %c0_i32_0 = arith.constant 0 : i32
    %c0_i32_1 = arith.constant 0 : i32
    return %c0_i32, %c0_i32_0 : i32, i32
  }
  func.func @transform_1(%arg0: i32, %arg1: i32) -> (i32, i32) {
    %c0_i32 = arith.constant 0 : i32
    return %arg0, %arg1 : i32, i32
  }
  func.func @transform_2(%arg0: i32, %arg1: i32) -> (i32, i32) {
    %c0_i32 = arith.constant 0 : i32
    %c0_i32_0 = arith.constant 0 : i32
    return %arg0, %c0_i32 : i32, i32
  }
}

</mosaic_0001>

<bundles_post_ra>
// kernel: tpu_custom_call.1
= control target key start
LH: loop header
LB: loop body
LE: loop exit
PB: predicated region body
PF: predicated region fallthrough
CT: control target
= control target key end

     0   :  { %8 = vsyncpa [#allocation5], 0  ;;  %s209_s0 = inlined_call_operand.<no memory space> [shape: f32[1,1], index: 0, kind: input, shape index: {}]   ;;  %s210_s1 = inlined_call_operand.hbm [shape: f32[8,256], index: 1, kind: input, shape index: {}]   ;;  %s211_s2 = inlined_call_operand.hbm [shape: f32[8,128], index: 2, kind: output, shape index: {}]  }
   0x1   :  { %9 = vsyncpa [#allocation6], 0  ;;  %s17_s11 = sshll.u32 %s210_s1, 4  ;;  %s179_s12 = smov [#allocation4]   ;;  %s18_s11 = int_to_ptr.hbm [resolvable:$true] %s17_s11 }
   0x2   :  { %s19_s13 = sshll.u32 %s179_s12, 4  ;;  %s20_s13 = int_to_ptr.vmem [resolvable:$true] %s19_s13 }
   0x3   :  { %22 = dma.hbm_to_vmem [thread:$0]  %s18_s11, 256, %s20_s13, [#allocation5]  }
   0x4   :  { %175 = dma.done.wait [#allocation5], 256  }
   0x5   :  { %176 = vsyncadd [#allocation5], 4294967040  ;;  %v42_v0 = vstv %s209_s0  ;;  %vm32_vm0 = vcmask 7168   ;;  %v180_v1 = vmov 0.0   ;;  %v34_v3 = vld [vmem:[#allocation4] sm:$0xff]  ;;  %v35_v4 = vld [vmem:[#allocation4 + $0x8] sm:$0xff] }
   0x6   :  { %113 = vrcp.f32 %v42_v0  ;;  %33 = vst.msk [vmem:[#allocation2] sm:$0xff] %vm32_vm0, %v180_v1  ;;  %v36_v5 = vmax.f32 %v34_v3, 1e-06  ;;  %v37_v6 = vmax.f32 %v35_v4, 1e-06  ;;  %vm69_vm1 = vweird.f32 %v42_v0  ;;  %s182_s1 = smov [#allocation7]  }
   0x7   :  { %v75_v8 = vand.u32 2147483648, %v42_v0  ;;  %v73_v10 = vand.u32 2147483647, %v42_v0  ;;  %v181_v27 = vmov 0   ;;  %s94_s16 = sshll.u32 %s182_s1, 4  ;;  %s96_s19 = sshll.u32 %s211_s2, 4  ;;  %s95_s16 = int_to_ptr.vmem [resolvable:$true] %s94_s16  ;;  %s97_s19 = int_to_ptr.hbm [resolvable:$true] %s96_s19 }
   0x8   :  { %115 = vlog2.f32 %v36_v5  ;;  %112 = vset.pattern.permute.xlu0 %v181_v27 }
   0x9   :  { %117 = vlog2.f32 %v37_v6  ;;  %v76_v12 = vor.u32 1.1754944e-38, %v75_v8  ;;  %vm74_vm4 = vcmp.eq.f32.partialorder %v73_v10, 8.507059e+37 }
   0xc   :  { %v114_v2 = vpop.eup %113 }
   0xd   :  { %v65_v7 = vmul.f32 %v114_v2, %v42_v0  ;;  %vm70_vm2 = vweird.f32 %v114_v2  ;;  %v49_v28 = vld [vmem:[#allocation2] sm:$0xff] }
   0xe   :  { %vm71_vm3 = vmor %vm69_vm1, %vm70_vm2  ;;  %v116_v14 = vpop.eup %115 }
   0xf   :  { %v66_v9 = vsub.f32 1.0, %v65_v7  ;;  %v118_v16 = vpop.eup %117  ;;  %v39_v17 = vmul.f32 0.6931472, %v116_v14 }
  0x10   :  { %v41_v19 = vmul.f32 0.6931472, %v118_v16 }
  0x11   :  { %v67_v11 = vmul.f32 %v114_v2, %v66_v9  ;;  %v43_v20 = vmul.f32 %v42_v0, %v39_v17 }
  0x12   :  { %v44_v21 = vmul.f32 %v42_v0, %v41_v19 }
  0x13   :  { %v68_v13 = vadd.f32 %v114_v2, %v67_v11  ;;  %v45_v22 = vmul.f32 1.442695, %v43_v20 }
  0x14   :  { %v47_v23 = vmul.f32 1.442695, %v44_v21 }
  0x15   :  { %v72_v15 = vsel %vm71_vm3, %v114_v2, %v68_v13  ;;  %119 = vpow2.f32 %v45_v22 }
  0x16   :  { %v77_v18 = vsel %vm74_vm4, %v76_v12, %v72_v15  ;;  %121 = vpow2.f32 %v47_v23 }
  0x17   :  { %106 = vpush %v77_v18 }
  0x1b   :  { %v120_v24 = vpop.eup %119 }
  0x1c   :  { %v122_v25 = vpop.eup %121 }
  0x1d   :  { %v50_v26 = vadd.f32 %v122_v25, %v120_v24 }
  0x1f   :  { %51 = vadd.xlane.f32.xlu0 %v50_v26 }
  0x48   :  { %s107_s0 = spop %106 }
  0x49   :  { %v79_v34 = vstv %s107_s0 }
  0x92   :  { %v52_v29 = vpop.xlane.xlu0 %51 }
  0x93   :  { %v53_v30 = vadd.f32 %v52_v29, %v49_v28 }
  0x95   :  { %55 = vst.msk [vmem:[#allocation2] sm:$0xff] %vm32_vm0, %v53_v30 }
  0x9c   :  { %v59_v31 = vld [vmem:[#allocation2] sm:$0xff] }
  0x9d   :  { %v60_v32 = vmul.f32 0.00390625, %v59_v31 }
  0x9f   :  { %123 = vlog2.f32 %v60_v32 }
  0xa5   :  { %v124_v33 = vpop.eup %123 }
  0xa6   :  { %v62_v35 = vmul.f32 0.6931472, %v124_v33 }
  0xa8   :  { %v80_v36 = vmul.f32 %v79_v34, %v62_v35 }
  0xaa   :  { %v81_v37 = vmul.f32 1.442695, %v80_v36 }
  0xac   :  { %125 = vpow2.f32 %v81_v37 }
  0xb2   :  { %v126_v38 = vpop.eup %125 }
  0xb3   :  { %85 = vperm.xlu0 %112, %v126_v38  }
 0x125   :  { %v86_v39 = vpop.permute.xlu0 %85 }
 0x126   :  { %88 = vst [vmem:[#allocation7] sm:$0xff] %v86_v39 }
 0x127   :  { %99 = dma.vmem_to_hbm [thread:$0]  %s95_s16, 128, %s97_s19, [#allocation6]  }
 0x128   :  { %177 = dma.done.wait [#allocation6], 128  }
 0x129   :  { %178 = vsyncadd [#allocation6], 4294967168 }
 0x12a   :  { %104 = vsyncpa [#allocation5], 1 }
 0x12b   :  { %105 = vsyncpa [#allocation6], 1 }

</bundles_post_ra>
